<compile_context>
chip_gen: v6e
topology: v6e:2x2x1
jax: 0.10.0
libtpu: 0.0.40
codegen_flags: <defaults>
</compile_context>

<pallas_src>
import math

import jax
import jax.numpy as jnp
import numpy as np
from jax.experimental import pallas as pl
from jax.experimental.pallas import tpu as pltpu


def _cdiv(a, b):
    return -(-a // b)


def _round_up(a, b):
    return _cdiv(a, b) * b


def _vmem_limit_bytes():
    """Generation-aware VMEM limit (v7x: 64 MiB/TC; v5e/v6e: 128 MiB)."""
    cap = 64 * 1024 * 1024  # conservative default (v7x-safe)
    try:
        info = pltpu.get_tpu_info()
        cap = int(getattr(info, "vmem_capacity_bytes", cap)) or cap
    except Exception:
        pass
    # ~0.6 of physical capacity: ~38 MiB on v7x, ~77 MiB on v5e/v6e.
    return min(int(cap * 0.6), 96 * 1024 * 1024)


def downsample_forward(x_blc, weight_ocikk, bias_oc, *, compute_dtype=None):
    """Forward pass of Downsample.

    x_blc:        (B, L, C)         with L = H*W a perfect square, H even
    weight_ocikk: (C_out, C, 4, 4)  PyTorch Conv2d weight layout
    bias_oc:      (C_out,)
    compute_dtype: operand dtype for the MXU (e.g. jnp.bfloat16 halves HBM
                   traffic; accumulation is always f32). Default: input dtype.
    returns:      (B, L // 4, C_out)
    """
    B, L, C = x_blc.shape
    H = int(round(math.sqrt(L)))
    assert H * H == L and H % 2 == 0, "L must be a perfect square with even side"
    W = H
    C_out = weight_ocikk.shape[0]
    OH, OW = H // 2, W // 2
    L_out = OH * OW

    out_dtype = x_blc.dtype
    cdt = jnp.dtype(compute_dtype) if compute_dtype is not None else jnp.dtype(x_blc.dtype)
    cb = cdt.itemsize
    ob = jnp.dtype(out_dtype).itemsize

    # ----- output-channel tiling: lane-dense, full 256-wide MXU columns -----
    LANE = 128
    C_out_p = _round_up(C_out, LANE)
    if C_out_p <= 512:
        tn = C_out_p
    elif C_out_p % 512 == 0:
        tn = 512
    elif C_out_p % 256 == 0:
        tn = 256
    else:
        tn = 128

    vmem_limit = _vmem_limit_bytes()
    budget = int(vmem_limit * 0.85)

    # keep the (resident, double-buffered) weight block within ~half the budget
    while tn > 128 and 2 * (16 * C * tn * cb) > budget // 2:
        tn //= 2
    n_tiles = C_out_p // tn

    # padded output width: the in-kernel row-shift slice starts at a*OWp, so
    # OWp must be a packed-sublane multiple (8 rows for f32, 16 for bf16).
    sub = max(8, 8 * (4 // cb))
    OWp = _round_up(OW, sub)

    def vmem_need(th_):
        tm_ = th_ * OWp
        x_blk = 8 * (th_ + 1) * OWp * C * cb        # all 8 slabs of one tile
        w_blk = 16 * C * tn * cb                    # resident weights
        o_blk = tm_ * tn * ob
        acc = tm_ * tn * 4                          # local f32 accumulator
        return 2 * x_blk + 2 * w_blk + 2 * o_blk + acc

    # spatial tile: target ~1024 output positions / step, shrink to fit budget.
    th = max(1, min(OH, _cdiv(1024, OWp)))
    while th > 1 and vmem_need(th) > budget:
        th = _cdiv(th, 2)
    # guarantee a parallel grid extent >= 2 so both v7x TensorCores are busy.
    if B == 1 and n_tiles == 1 and _cdiv(OH, th) == 1 and OH > 1:
        th = _cdiv(OH, 2)
    m_tiles = _cdiv(OH, th)
    OHp = m_tiles * th
    tm = th * OWp

    # -------- XLA glue: parity/col-shift slabs, row-tiled with 1-row overlap --
    # TODO(synk): this ~2x-of-input HBM intermediate could be removed by fusing
    # the pad/transpose glue into the input DMA (allow_input_fusion) — biggest
    # remaining lever on v5e / small-C_out mem-bound cases.
    x_nhwc = x_blc.reshape(B, H, W, C).astype(cdt)
    xp = jnp.pad(x_nhwc, ((0, 0), (1, 1), (1, 1), (0, 0)))            # (B,H+2,W+2,C)
    planes = xp.reshape(B, OH + 1, 2, OW + 1, 2, C)
    planes = jnp.transpose(planes, (0, 2, 4, 1, 3, 5))                 # (B,p,q,OH+1,OW+1,C)
    slabs = jnp.stack([planes[..., 0:OW, :], planes[..., 1:OW + 1, :]], axis=3)
    # (B,p,q,b',OH+1,OW,C): pad rows -> OHp+1 and cols -> OWp with zeros.
    slabs = jnp.pad(slabs, ((0, 0),) * 4 + ((0, OHp - OH), (0, OWp - OW), (0, 0)))
    main = slabs[..., :OHp, :, :].reshape(B, 2, 2, 2, m_tiles, th, OWp, C)
    extra = jnp.expand_dims(slabs[..., th::th, :, :], 5)               # (.,m,1,OWp,C)
    tiles = jnp.concatenate([main, extra], axis=5)                     # (.,m,th+1,OWp,C)
    tiles = jnp.transpose(tiles, (0, 4, 1, 2, 3, 5, 6, 7))             # (B,m,p,q,b',th+1,OWp,C)
    tiles = tiles.reshape(B * m_tiles, 8, (th + 1) * OWp, C)

    # weight (C_out, C, kh, kw) -> w8[j, a, C, C_out_p], j = 4p+2q+b', kh=2a+p, kw=2b'+q
    w = jnp.transpose(weight_ocikk, (2, 3, 1, 0))                      # (kh,kw,C,Co)
    w = w.reshape(2, 2, 2, 2, C, C_out)                                # (a,p,b',q,C,Co)
    w = jnp.transpose(w, (1, 3, 2, 0, 4, 5)).reshape(8, 2, C, C_out)   # (p,q,b',a,C,Co)
    w8 = jnp.pad(w, ((0, 0), (0, 0), (0, 0), (0, C_out_p - C_out))).astype(cdt)
    b2 = jnp.pad(bias_oc.astype(jnp.float32), (0, C_out_p - C_out)).reshape(1, C_out_p)

    # ---------------- Pallas kernel ------------------------------------------
    # TODO(synk): for very small C the MXU contraction (K=C) is underfed; taps
    # could be folded into K (2C..16C) at the cost of a larger HBM intermediate
    # — skipped here since narrow-channel layers are memory-bound anyway.
    def kernel(x_ref, w_ref, b_ref, o_ref):
        # x_ref: (1, 8, (th+1)*OWp, C)  all 8 slabs of one spatial tile
        # w_ref: (8, 2, C, tn)          resident across b and m
        # b_ref: (1, tn)                f32 bias tile
        # o_ref: (1, tm, tn)
        acc = jnp.zeros((tm, tn), jnp.float32)
        for j in range(8):         # slab = (row parity, col parity, col shift)
            for a in range(2):     # row shift: static, sublane-aligned slice
                xs = x_ref[0, j, a * OWp:a * OWp + tm, :]
                acc = acc + jnp.dot(xs, w_ref[j, a],
                                    preferred_element_type=jnp.float32)
        o_ref[0] = (acc + b_ref[...]).astype(o_ref.dtype)

    out_p = pl.pallas_call(
        kernel,
        out_shape=jax.ShapeDtypeStruct((B * m_tiles, tm, C_out_p), out_dtype),
        grid_spec=pltpu.PrefetchScalarGridSpec(
            num_scalar_prefetch=0,
            grid=(B, m_tiles, n_tiles),
            in_specs=[
                pl.BlockSpec((1, 8, (th + 1) * OWp, C),
                             lambda b, m, n: (b * m_tiles + m, 0, 0, 0)),
                pl.BlockSpec((8, 2, C, tn), lambda b, m, n: (0, 0, 0, n)),
                pl.BlockSpec((1, tn), lambda b, m, n: (0, n)),
            ],
            out_specs=pl.BlockSpec((1, tm, tn),
                                   lambda b, m, n: (b * m_tiles + m, 0, n)),
        ),
        compiler_params=pltpu.CompilerParams(
            dimension_semantics=("parallel", "parallel", "parallel"),
            vmem_limit_bytes=vmem_limit,
        ),
    )(tiles, w8, b2)

    out = out_p.reshape(B, OHp, OWp, C_out_p)[:, :OH, :OW, :C_out]
    return out.reshape(B, L_out, C_out)


# ----------------------------------------------------------------------------
# Reference (pure JAX, mirrors torch.nn.Conv2d semantics) for verification
# ----------------------------------------------------------------------------
def downsample_reference(x_blc, weight_ocikk, bias_oc):
    B, L, C = x_blc.shape
    H = int(round(math.sqrt(L)))
    x_nchw = jnp.transpose(x_blc, (0, 2, 1)).reshape(B, C, H, H)
    out = jax.lax.conv_general_dilated(
        x_nchw, weight_ocikk,
        window_strides=(2, 2), padding=((1, 1), (1, 1)),
        dimension_numbers=("NCHW", "OIHW", "NCHW"),
    ) + bias_oc.reshape(1, -1, 1, 1)
    B_, Co, OH, OW = out.shape
    return jnp.transpose(out.reshape(B_, Co, OH * OW), (0, 2, 1))


if __name__ == "__main__":
    # Small deterministic example consistent with the module's forward:
    # B=2, C(in)=4, H=W=16 => L=256; out_channel=8 => out shape (2, 64, 8)
    B, C_in, C_out, H = 2, 4, 8, 16
    L = H * H

    key = jax.random.PRNGKey(0)
    k_x, k_w, k_b = jax.random.split(key, 3)

    x = jax.random.normal(k_x, (B, L, C_in), dtype=jnp.float32)

    fan_in = C_in * 4 * 4
    bound = 1.0 / math.sqrt(fan_in)
    weight = jax.random.uniform(k_w, (C_out, C_in, 4, 4), jnp.float32, -bound, bound)
    bias = jax.random.uniform(k_b, (C_out,), jnp.float32, -bound, bound)

    ref = jax.block_until_ready(downsample_reference(x, weight, bias))

    # f32 path (tight tolerance, matches torch f32 conv semantics).
    out = jax.block_until_ready(downsample_forward(x, weight, bias))
    assert out.shape == (B, L // 4, C_out), out.shape
    assert np.allclose(np.asarray(out), np.asarray(ref), atol=2e-4, rtol=2e-4)

    # bf16-operand path (halved HBM traffic / fast MXU), f32 accumulation.
    out_bf16 = jax.block_until_ready(
        downsample_forward(x, weight, bias, compute_dtype=jnp.bfloat16))
    assert out_bf16.shape == (B, L // 4, C_out)
    assert np.allclose(np.asarray(out_bf16), np.asarray(ref), atol=5e-2, rtol=5e-2)

    print("KERNEL_OK")
</pallas_src>

<mosaic_0001>
module attributes {stable_mosaic.version = 11 : i64} {
  func.func @kernel(%arg0: i32, %arg1: i32, %arg2: i32, %arg3: memref<1x8x72x4xf32, #tpu.memory_space<vmem>>, %arg4: memref<8x2x4x128xf32, #tpu.memory_space<vmem>>, %arg5: memref<1x128xf32, #tpu.memory_space<vmem>>, %arg6: memref<1x64x128xf32, #tpu.memory_space<vmem>>) attributes {dimension_semantics = [#tpu.dimension_semantics<parallel>, #tpu.dimension_semantics<parallel>, #tpu.dimension_semantics<parallel>], iteration_bounds = array<i64: 2, 1, 1>, scalar_prefetch = 0 : i64, scratch_operands = 0 : i64, tpu.core_type = #tpu.core_type<tc>, window_params = [{transform_indices = @transform_0, window_bounds = array<i64: 1, 8, 72, 4>}, {transform_indices = @transform_1, window_bounds = array<i64: 8, 2, 4, 128>}, {transform_indices = @transform_2, window_bounds = array<i64: 1, 128>}, {transform_indices = @transform_3, window_bounds = array<i64: 1, 64, 128>}]} {
    %cst = arith.constant 0.000000e+00 : f32
    %0 = vector.broadcast %cst : f32 to vector<64x128xf32>
    %c0 = arith.constant 0 : index
    %c0_0 = arith.constant 0 : index
    %c0_1 = arith.constant 0 : index
    %c0_2 = arith.constant 0 : index
    %1 = vector.load %arg3[%c0, %c0_0, %c0_1, %c0_2] : memref<1x8x72x4xf32, #tpu.memory_space<vmem>>, vector<1x1x64x4xf32>
    %2 = vector.shape_cast %1 : vector<1x1x64x4xf32> to vector<64x4xf32>
    %c0_3 = arith.constant 0 : index
    %c0_4 = arith.constant 0 : index
    %c0_5 = arith.constant 0 : index
    %c0_6 = arith.constant 0 : index
    %3 = vector.load %arg4[%c0_3, %c0_4, %c0_5, %c0_6] : memref<8x2x4x128xf32, #tpu.memory_space<vmem>>, vector<1x1x4x128xf32>
    %4 = vector.shape_cast %3 : vector<1x1x4x128xf32> to vector<4x128xf32>
    %cst_7 = arith.constant dense<0.000000e+00> : vector<64x128xf32>
    %5 = tpu.matmul %2, %4, %cst_7 {dimension_numbers = #tpu.dot_dimension_numbers<[1], [0], [0], [1], [0, 0, 1, 1], [], []>} : vector<64x4xf32>, vector<4x128xf32>, vector<64x128xf32> -> vector<64x128xf32>
    %6 = arith.addf %0, %5 : vector<64x128xf32>
    %c0_8 = arith.constant 0 : index
    %c0_9 = arith.constant 0 : index
    %c8 = arith.constant 8 : index
    %c0_10 = arith.constant 0 : index
    %7 = vector.load %arg3[%c0_8, %c0_9, %c8, %c0_10] : memref<1x8x72x4xf32, #tpu.memory_space<vmem>>, vector<1x1x64x4xf32>
    %8 = vector.shape_cast %7 : vector<1x1x64x4xf32> to vector<64x4xf32>
    %c0_11 = arith.constant 0 : index
    %c1 = arith.constant 1 : index
    %c0_12 = arith.constant 0 : index
    %c0_13 = arith.constant 0 : index
    %9 = vector.load %arg4[%c0_11, %c1, %c0_12, %c0_13] : memref<8x2x4x128xf32, #tpu.memory_space<vmem>>, vector<1x1x4x128xf32>
    %10 = vector.shape_cast %9 : vector<1x1x4x128xf32> to vector<4x128xf32>
    %cst_14 = arith.constant dense<0.000000e+00> : vector<64x128xf32>
    %11 = tpu.matmul %8, %10, %cst_14 {dimension_numbers = #tpu.dot_dimension_numbers<[1], [0], [0], [1], [0, 0, 1, 1], [], []>} : vector<64x4xf32>, vector<4x128xf32>, vector<64x128xf32> -> vector<64x128xf32>
    %12 = arith.addf %6, %11 : vector<64x128xf32>
    %c0_15 = arith.constant 0 : index
    %c1_16 = arith.constant 1 : index
    %c0_17 = arith.constant 0 : index
    %c0_18 = arith.constant 0 : index
    %13 = vector.load %arg3[%c0_15, %c1_16, %c0_17, %c0_18] : memref<1x8x72x4xf32, #tpu.memory_space<vmem>>, vector<1x1x64x4xf32>
    %14 = vector.shape_cast %13 : vector<1x1x64x4xf32> to vector<64x4xf32>
    %c1_19 = arith.constant 1 : index
    %c0_20 = arith.constant 0 : index
    %c0_21 = arith.constant 0 : index
    %c0_22 = arith.constant 0 : index
    %15 = vector.load %arg4[%c1_19, %c0_20, %c0_21, %c0_22] : memref<8x2x4x128xf32, #tpu.memory_space<vmem>>, vector<1x1x4x128xf32>
    %16 = vector.shape_cast %15 : vector<1x1x4x128xf32> to vector<4x128xf32>
    %cst_23 = arith.constant dense<0.000000e+00> : vector<64x128xf32>
    %17 = tpu.matmul %14, %16, %cst_23 {dimension_numbers = #tpu.dot_dimension_numbers<[1], [0], [0], [1], [0, 0, 1, 1], [], []>} : vector<64x4xf32>, vector<4x128xf32>, vector<64x128xf32> -> vector<64x128xf32>
    %18 = arith.addf %12, %17 : vector<64x128xf32>
    %c0_24 = arith.constant 0 : index
    %c1_25 = arith.constant 1 : index
    %c8_26 = arith.constant 8 : index
    %c0_27 = arith.constant 0 : index
    %19 = vector.load %arg3[%c0_24, %c1_25, %c8_26, %c0_27] : memref<1x8x72x4xf32, #tpu.memory_space<vmem>>, vector<1x1x64x4xf32>
    %20 = vector.shape_cast %19 : vector<1x1x64x4xf32> to vector<64x4xf32>
    %c1_28 = arith.constant 1 : index
    %c1_29 = arith.constant 1 : index
    %c0_30 = arith.constant 0 : index
    %c0_31 = arith.constant 0 : index
    %21 = vector.load %arg4[%c1_28, %c1_29, %c0_30, %c0_31] : memref<8x2x4x128xf32, #tpu.memory_space<vmem>>, vector<1x1x4x128xf32>
    %22 = vector.shape_cast %21 : vector<1x1x4x128xf32> to vector<4x128xf32>
    %cst_32 = arith.constant dense<0.000000e+00> : vector<64x128xf32>
    %23 = tpu.matmul %20, %22, %cst_32 {dimension_numbers = #tpu.dot_dimension_numbers<[1], [0], [0], [1], [0, 0, 1, 1], [], []>} : vector<64x4xf32>, vector<4x128xf32>, vector<64x128xf32> -> vector<64x128xf32>
    %24 = arith.addf %18, %23 : vector<64x128xf32>
    %c0_33 = arith.constant 0 : index
    %c2 = arith.constant 2 : index
    %c0_34 = arith.constant 0 : index
    %c0_35 = arith.constant 0 : index
    %25 = vector.load %arg3[%c0_33, %c2, %c0_34, %c0_35] : memref<1x8x72x4xf32, #tpu.memory_space<vmem>>, vector<1x1x64x4xf32>
    %26 = vector.shape_cast %25 : vector<1x1x64x4xf32> to vector<64x4xf32>
    %c2_36 = arith.constant 2 : index
    %c0_37 = arith.constant 0 : index
    %c0_38 = arith.constant 0 : index
    %c0_39 = arith.constant 0 : index
    %27 = vector.load %arg4[%c2_36, %c0_37, %c0_38, %c0_39] : memref<8x2x4x128xf32, #tpu.memory_space<vmem>>, vector<1x1x4x128xf32>
    %28 = vector.shape_cast %27 : vector<1x1x4x128xf32> to vector<4x128xf32>
    %cst_40 = arith.constant dense<0.000000e+00> : vector<64x128xf32>
    %29 = tpu.matmul %26, %28, %cst_40 {dimension_numbers = #tpu.dot_dimension_numbers<[1], [0], [0], [1], [0, 0, 1, 1], [], []>} : vector<64x4xf32>, vector<4x128xf32>, vector<64x128xf32> -> vector<64x128xf32>
    %30 = arith.addf %24, %29 : vector<64x128xf32>
    %c0_41 = arith.constant 0 : index
    %c2_42 = arith.constant 2 : index
    %c8_43 = arith.constant 8 : index
    %c0_44 = arith.constant 0 : index
    %31 = vector.load %arg3[%c0_41, %c2_42, %c8_43, %c0_44] : memref<1x8x72x4xf32, #tpu.memory_space<vmem>>, vector<1x1x64x4xf32>
    %32 = vector.shape_cast %31 : vector<1x1x64x4xf32> to vector<64x4xf32>
    %c2_45 = arith.constant 2 : index
    %c1_46 = arith.constant 1 : index
    %c0_47 = arith.constant 0 : index
    %c0_48 = arith.constant 0 : index
    %33 = vector.load %arg4[%c2_45, %c1_46, %c0_47, %c0_48] : memref<8x2x4x128xf32, #tpu.memory_space<vmem>>, vector<1x1x4x128xf32>
    %34 = vector.shape_cast %33 : vector<1x1x4x128xf32> to vector<4x128xf32>
    %cst_49 = arith.constant dense<0.000000e+00> : vector<64x128xf32>
    %35 = tpu.matmul %32, %34, %cst_49 {dimension_numbers = #tpu.dot_dimension_numbers<[1], [0], [0], [1], [0, 0, 1, 1], [], []>} : vector<64x4xf32>, vector<4x128xf32>, vector<64x128xf32> -> vector<64x128xf32>
    %36 = arith.addf %30, %35 : vector<64x128xf32>
    %c0_50 = arith.constant 0 : index
    %c3 = arith.constant 3 : index
    %c0_51 = arith.constant 0 : index
    %c0_52 = arith.constant 0 : index
    %37 = vector.load %arg3[%c0_50, %c3, %c0_51, %c0_52] : memref<1x8x72x4xf32, #tpu.memory_space<vmem>>, vector<1x1x64x4xf32>
    %38 = vector.shape_cast %37 : vector<1x1x64x4xf32> to vector<64x4xf32>
    %c3_53 = arith.constant 3 : index
    %c0_54 = arith.constant 0 : index
    %c0_55 = arith.constant 0 : index
    %c0_56 = arith.constant 0 : index
    %39 = vector.load %arg4[%c3_53, %c0_54, %c0_55, %c0_56] : memref<8x2x4x128xf32, #tpu.memory_space<vmem>>, vector<1x1x4x128xf32>
    %40 = vector.shape_cast %39 : vector<1x1x4x128xf32> to vector<4x128xf32>
    %cst_57 = arith.constant dense<0.000000e+00> : vector<64x128xf32>
    %41 = tpu.matmul %38, %40, %cst_57 {dimension_numbers = #tpu.dot_dimension_numbers<[1], [0], [0], [1], [0, 0, 1, 1], [], []>} : vector<64x4xf32>, vector<4x128xf32>, vector<64x128xf32> -> vector<64x128xf32>
    %42 = arith.addf %36, %41 : vector<64x128xf32>
    %c0_58 = arith.constant 0 : index
    %c3_59 = arith.constant 3 : index
    %c8_60 = arith.constant 8 : index
    %c0_61 = arith.constant 0 : index
    %43 = vector.load %arg3[%c0_58, %c3_59, %c8_60, %c0_61] : memref<1x8x72x4xf32, #tpu.memory_space<vmem>>, vector<1x1x64x4xf32>
    %44 = vector.shape_cast %43 : vector<1x1x64x4xf32> to vector<64x4xf32>
    %c3_62 = arith.constant 3 : index
    %c1_63 = arith.constant 1 : index
    %c0_64 = arith.constant 0 : index
    %c0_65 = arith.constant 0 : index
    %45 = vector.load %arg4[%c3_62, %c1_63, %c0_64, %c0_65] : memref<8x2x4x128xf32, #tpu.memory_space<vmem>>, vector<1x1x4x128xf32>
    %46 = vector.shape_cast %45 : vector<1x1x4x128xf32> to vector<4x128xf32>
    %cst_66 = arith.constant dense<0.000000e+00> : vector<64x128xf32>
    %47 = tpu.matmul %44, %46, %cst_66 {dimension_numbers = #tpu.dot_dimension_numbers<[1], [0], [0], [1], [0, 0, 1, 1], [], []>} : vector<64x4xf32>, vector<4x128xf32>, vector<64x128xf32> -> vector<64x128xf32>
    %48 = arith.addf %42, %47 : vector<64x128xf32>
    %c0_67 = arith.constant 0 : index
    %c4 = arith.constant 4 : index
    %c0_68 = arith.constant 0 : index
    %c0_69 = arith.constant 0 : index
    %49 = vector.load %arg3[%c0_67, %c4, %c0_68, %c0_69] : memref<1x8x72x4xf32, #tpu.memory_space<vmem>>, vector<1x1x64x4xf32>
    %50 = vector.shape_cast %49 : vector<1x1x64x4xf32> to vector<64x4xf32>
    %c4_70 = arith.constant 4 : index
    %c0_71 = arith.constant 0 : index
    %c0_72 = arith.constant 0 : index
    %c0_73 = arith.constant 0 : index
    %51 = vector.load %arg4[%c4_70, %c0_71, %c0_72, %c0_73] : memref<8x2x4x128xf32, #tpu.memory_space<vmem>>, vector<1x1x4x128xf32>
    %52 = vector.shape_cast %51 : vector<1x1x4x128xf32> to vector<4x128xf32>
    %cst_74 = arith.constant dense<0.000000e+00> : vector<64x128xf32>
    %53 = tpu.matmul %50, %52, %cst_74 {dimension_numbers = #tpu.dot_dimension_numbers<[1], [0], [0], [1], [0, 0, 1, 1], [], []>} : vector<64x4xf32>, vector<4x128xf32>, vector<64x128xf32> -> vector<64x128xf32>
    %54 = arith.addf %48, %53 : vector<64x128xf32>
    %c0_75 = arith.constant 0 : index
    %c4_76 = arith.constant 4 : index
    %c8_77 = arith.constant 8 : index
    %c0_78 = arith.constant 0 : index
    %55 = vector.load %arg3[%c0_75, %c4_76, %c8_77, %c0_78] : memref<1x8x72x4xf32, #tpu.memory_space<vmem>>, vector<1x1x64x4xf32>
    %56 = vector.shape_cast %55 : vector<1x1x64x4xf32> to vector<64x4xf32>
    %c4_79 = arith.constant 4 : index
    %c1_80 = arith.constant 1 : index
    %c0_81 = arith.constant 0 : index
    %c0_82 = arith.constant 0 : index
    %57 = vector.load %arg4[%c4_79, %c1_80, %c0_81, %c0_82] : memref<8x2x4x128xf32, #tpu.memory_space<vmem>>, vector<1x1x4x128xf32>
    %58 = vector.shape_cast %57 : vector<1x1x4x128xf32> to vector<4x128xf32>
    %cst_83 = arith.constant dense<0.000000e+00> : vector<64x128xf32>
    %59 = tpu.matmul %56, %58, %cst_83 {dimension_numbers = #tpu.dot_dimension_numbers<[1], [0], [0], [1], [0, 0, 1, 1], [], []>} : vector<64x4xf32>, vector<4x128xf32>, vector<64x128xf32> -> vector<64x128xf32>
    %60 = arith.addf %54, %59 : vector<64x128xf32>
    %c0_84 = arith.constant 0 : index
    %c5 = arith.constant 5 : index
    %c0_85 = arith.constant 0 : index
    %c0_86 = arith.constant 0 : index
    %61 = vector.load %arg3[%c0_84, %c5, %c0_85, %c0_86] : memref<1x8x72x4xf32, #tpu.memory_space<vmem>>, vector<1x1x64x4xf32>
    %62 = vector.shape_cast %61 : vector<1x1x64x4xf32> to vector<64x4xf32>
    %c5_87 = arith.constant 5 : index
    %c0_88 = arith.constant 0 : index
    %c0_89 = arith.constant 0 : index
    %c0_90 = arith.constant 0 : index
    %63 = vector.load %arg4[%c5_87, %c0_88, %c0_89, %c0_90] : memref<8x2x4x128xf32, #tpu.memory_space<vmem>>, vector<1x1x4x128xf32>
    %64 = vector.shape_cast %63 : vector<1x1x4x128xf32> to vector<4x128xf32>
    %cst_91 = arith.constant dense<0.000000e+00> : vector<64x128xf32>
    %65 = tpu.matmul %62, %64, %cst_91 {dimension_numbers = #tpu.dot_dimension_numbers<[1], [0], [0], [1], [0, 0, 1, 1], [], []>} : vector<64x4xf32>, vector<4x128xf32>, vector<64x128xf32> -> vector<64x128xf32>
    %66 = arith.addf %60, %65 : vector<64x128xf32>
    %c0_92 = arith.constant 0 : index
    %c5_93 = arith.constant 5 : index
    %c8_94 = arith.constant 8 : index
    %c0_95 = arith.constant 0 : index
    %67 = vector.load %arg3[%c0_92, %c5_93, %c8_94, %c0_95] : memref<1x8x72x4xf32, #tpu.memory_space<vmem>>, vector<1x1x64x4xf32>
    %68 = vector.shape_cast %67 : vector<1x1x64x4xf32> to vector<64x4xf32>
    %c5_96 = arith.constant 5 : index
    %c1_97 = arith.constant 1 : index
    %c0_98 = arith.constant 0 : index
    %c0_99 = arith.constant 0 : index
    %69 = vector.load %arg4[%c5_96, %c1_97, %c0_98, %c0_99] : memref<8x2x4x128xf32, #tpu.memory_space<vmem>>, vector<1x1x4x128xf32>
    %70 = vector.shape_cast %69 : vector<1x1x4x128xf32> to vector<4x128xf32>
    %cst_100 = arith.constant dense<0.000000e+00> : vector<64x128xf32>
    %71 = tpu.matmul %68, %70, %cst_100 {dimension_numbers = #tpu.dot_dimension_numbers<[1], [0], [0], [1], [0, 0, 1, 1], [], []>} : vector<64x4xf32>, vector<4x128xf32>, vector<64x128xf32> -> vector<64x128xf32>
    %72 = arith.addf %66, %71 : vector<64x128xf32>
    %c0_101 = arith.constant 0 : index
    %c6 = arith.constant 6 : index
    %c0_102 = arith.constant 0 : index
    %c0_103 = arith.constant 0 : index
    %73 = vector.load %arg3[%c0_101, %c6, %c0_102, %c0_103] : memref<1x8x72x4xf32, #tpu.memory_space<vmem>>, vector<1x1x64x4xf32>
    %74 = vector.shape_cast %73 : vector<1x1x64x4xf32> to vector<64x4xf32>
    %c6_104 = arith.constant 6 : index
    %c0_105 = arith.constant 0 : index
    %c0_106 = arith.constant 0 : index
    %c0_107 = arith.constant 0 : index
    %75 = vector.load %arg4[%c6_104, %c0_105, %c0_106, %c0_107] : memref<8x2x4x128xf32, #tpu.memory_space<vmem>>, vector<1x1x4x128xf32>
    %76 = vector.shape_cast %75 : vector<1x1x4x128xf32> to vector<4x128xf32>
    %cst_108 = arith.constant dense<0.000000e+00> : vector<64x128xf32>
    %77 = tpu.matmul %74, %76, %cst_108 {dimension_numbers = #tpu.dot_dimension_numbers<[1], [0], [0], [1], [0, 0, 1, 1], [], []>} : vector<64x4xf32>, vector<4x128xf32>, vector<64x128xf32> -> vector<64x128xf32>
    %78 = arith.addf %72, %77 : vector<64x128xf32>
    %c0_109 = arith.constant 0 : index
    %c6_110 = arith.constant 6 : index
    %c8_111 = arith.constant 8 : index
    %c0_112 = arith.constant 0 : index
    %79 = vector.load %arg3[%c0_109, %c6_110, %c8_111, %c0_112] : memref<1x8x72x4xf32, #tpu.memory_space<vmem>>, vector<1x1x64x4xf32>
    %80 = vector.shape_cast %79 : vector<1x1x64x4xf32> to vector<64x4xf32>
    %c6_113 = arith.constant 6 : index
    %c1_114 = arith.constant 1 : index
    %c0_115 = arith.constant 0 : index
    %c0_116 = arith.constant 0 : index
    %81 = vector.load %arg4[%c6_113, %c1_114, %c0_115, %c0_116] : memref<8x2x4x128xf32, #tpu.memory_space<vmem>>, vector<1x1x4x128xf32>
    %82 = vector.shape_cast %81 : vector<1x1x4x128xf32> to vector<4x128xf32>
    %cst_117 = arith.constant dense<0.000000e+00> : vector<64x128xf32>
    %83 = tpu.matmul %80, %82, %cst_117 {dimension_numbers = #tpu.dot_dimension_numbers<[1], [0], [0], [1], [0, 0, 1, 1], [], []>} : vector<64x4xf32>, vector<4x128xf32>, vector<64x128xf32> -> vector<64x128xf32>
    %84 = arith.addf %78, %83 : vector<64x128xf32>
    %c0_118 = arith.constant 0 : index
    %c7 = arith.constant 7 : index
    %c0_119 = arith.constant 0 : index
    %c0_120 = arith.constant 0 : index
    %85 = vector.load %arg3[%c0_118, %c7, %c0_119, %c0_120] : memref<1x8x72x4xf32, #tpu.memory_space<vmem>>, vector<1x1x64x4xf32>
    %86 = vector.shape_cast %85 : vector<1x1x64x4xf32> to vector<64x4xf32>
    %c7_121 = arith.constant 7 : index
    %c0_122 = arith.constant 0 : index
    %c0_123 = arith.constant 0 : index
    %c0_124 = arith.constant 0 : index
    %87 = vector.load %arg4[%c7_121, %c0_122, %c0_123, %c0_124] : memref<8x2x4x128xf32, #tpu.memory_space<vmem>>, vector<1x1x4x128xf32>
    %88 = vector.shape_cast %87 : vector<1x1x4x128xf32> to vector<4x128xf32>
    %cst_125 = arith.constant dense<0.000000e+00> : vector<64x128xf32>
    %89 = tpu.matmul %86, %88, %cst_125 {dimension_numbers = #tpu.dot_dimension_numbers<[1], [0], [0], [1], [0, 0, 1, 1], [], []>} : vector<64x4xf32>, vector<4x128xf32>, vector<64x128xf32> -> vector<64x128xf32>
    %90 = arith.addf %84, %89 : vector<64x128xf32>
    %c0_126 = arith.constant 0 : index
    %c7_127 = arith.constant 7 : index
    %c8_128 = arith.constant 8 : index
    %c0_129 = arith.constant 0 : index
    %91 = vector.load %arg3[%c0_126, %c7_127, %c8_128, %c0_129] : memref<1x8x72x4xf32, #tpu.memory_space<vmem>>, vector<1x1x64x4xf32>
    %92 = vector.shape_cast %91 : vector<1x1x64x4xf32> to vector<64x4xf32>
    %c7_130 = arith.constant 7 : index
    %c1_131 = arith.constant 1 : index
    %c0_132 = arith.constant 0 : index
    %c0_133 = arith.constant 0 : index
    %93 = vector.load %arg4[%c7_130, %c1_131, %c0_132, %c0_133] : memref<8x2x4x128xf32, #tpu.memory_space<vmem>>, vector<1x1x4x128xf32>
    %94 = vector.shape_cast %93 : vector<1x1x4x128xf32> to vector<4x128xf32>
    %cst_134 = arith.constant dense<0.000000e+00> : vector<64x128xf32>
    %95 = tpu.matmul %92, %94, %cst_134 {dimension_numbers = #tpu.dot_dimension_numbers<[1], [0], [0], [1], [0, 0, 1, 1], [], []>} : vector<64x4xf32>, vector<4x128xf32>, vector<64x128xf32> -> vector<64x128xf32>
    %96 = arith.addf %90, %95 : vector<64x128xf32>
    %c0_135 = arith.constant 0 : index
    %c0_136 = arith.constant 0 : index
    %97 = vector.load %arg5[%c0_135, %c0_136] : memref<1x128xf32, #tpu.memory_space<vmem>>, vector<1x128xf32>
    %98 = vector.broadcast %97 : vector<1x128xf32> to vector<64x128xf32>
    %99 = arith.addf %96, %98 : vector<64x128xf32>
    %c0_137 = arith.constant 0 : index
    %c0_138 = arith.constant 0 : index
    %c0_139 = arith.constant 0 : index
    %100 = vector.load %arg6[%c0_137, %c0_138, %c0_139] : memref<1x64x128xf32, #tpu.memory_space<vmem>>, vector<1x64x128xf32>
    %101 = vector.shape_cast %100 : vector<1x64x128xf32> to vector<64x128xf32>
    %102 = vector.shape_cast %99 : vector<64x128xf32> to vector<1x64x128xf32>
    tpu.vector_store %arg6[%c0_137, %c0_138, %c0_139], %102 {strides = array<i32>} : memref<1x64x128xf32, #tpu.memory_space<vmem>>, vector<1x64x128xf32>,
    return
  }
  func.func @transform_0(%arg0: i32, %arg1: i32, %arg2: i32) -> (i32, i32, i32, i32) {
    %c1_i32 = arith.constant 1 : i32
    %0 = arith.muli %arg0, %c1_i32 : i32
    %1 = arith.addi %0, %arg1 : i32
    %c0_i32 = arith.constant 0 : i32
    %c0_i32_0 = arith.constant 0 : i32
    %c0_i32_1 = arith.constant 0 : i32
    %c0_i32_2 = arith.constant 0 : i32
    return %1, %c0_i32, %c0_i32_0, %c0_i32_1 : i32, i32, i32, i32
  }
  func.func @transform_1(%arg0: i32, %arg1: i32, %arg2: i32) -> (i32, i32, i32, i32) {
    %c0_i32 = arith.constant 0 : i32
    %c0_i32_0 = arith.constant 0 : i32
    %c0_i32_1 = arith.constant 0 : i32
    %c0_i32_2 = arith.constant 0 : i32
    return %c0_i32, %c0_i32_0, %c0_i32_1, %arg2 : i32, i32, i32, i32
  }
  func.func @transform_2(%arg0: i32, %arg1: i32, %arg2: i32) -> (i32, i32) {
    %c0_i32 = arith.constant 0 : i32
    %c0_i32_0 = arith.constant 0 : i32
    return %c0_i32, %arg2 : i32, i32
  }
  func.func @transform_3(%arg0: i32, %arg1: i32, %arg2: i32) -> (i32, i32, i32) {
    %c1_i32 = arith.constant 1 : i32
    %0 = arith.muli %arg0, %c1_i32 : i32
    %1 = arith.addi %0, %arg1 : i32
    %c0_i32 = arith.constant 0 : i32
    %c0_i32_0 = arith.constant 0 : i32
    return %1, %c0_i32, %arg2 : i32, i32, i32
  }
}

</mosaic_0001>

<bundles_post_ra>
// kernel: tpu_custom_call.1
= control target key start
LH: loop header
LB: loop body
LE: loop exit
PB: predicated region body
PF: predicated region fallthrough
CT: control target
= control target key end

     0   :  { %8 = vsyncpa [#allocation3], 0  ;;  %s4118_s0 = inlined_call_operand.vmem [shape: f32[2,8,72,4], index: 0, kind: input, shape index: {}]   ;;  %s4119_s1 = inlined_call_operand.vmem [shape: f32[8,2,4,128], index: 1, kind: input, shape index: {}]   ;;  %s4120_s2 = inlined_call_operand.vmem [shape: f32[1,128], index: 2, kind: input, shape index: {}]   ;;  %s4121_s3 = inlined_call_operand.hbm [shape: f32[2,64,128], index: 3, kind: output, shape index: {}]  }
   0x1   :  { %10 = vsyncpa [#allocation3 + $0x1], 0  ;;  %s3551_s12 = smov 0   ;;  %s3553_s13 = smov 0  }
   0x2   :  { %s3555_s14 = smov 0   ;;  %s3557_s15 = smov 0  }
   0x3   :  { %s3559_s16 = smov 0   ;;  %s3561_s17 = smov 0  }
   0x4 LB: > { %s2737_s18 = sadd.s32 4294967295, %s3526_s17   ;;  %s2738_s19 = sadd.s32 4294967294, %s3526_s17   ;;  %s3526_s17 = sphi %s3561_s17, %s16_s17   ;;  %s3522_s16 = sphi %s3559_s16, %s4148_s16   ;;  %s3518_s15 = sphi %s3557_s15, %s4147_s15   ;;  %s3514_s14 = sphi %s3555_s14, %s4146_s14   ;;  %s3510_s13 = sphi %s3553_s13, %s4145_s13   ;;  %s3506_s12 = sphi %s3551_s12, %s4144_s12  }
   0x5   : > { %s35_s20 = sadd.s32 1, %s3522_s16  ;;  %s126_s21 = sadd.s32 1, %s3514_s14 }
   0x6   : > { %p37_p0 = scmp.ge.s32.totalorder %s35_s20, 2  ;;  %p136_p1 = scmp.ne.s32.totalorder %s3514_s14, %s3510_s13 }
   0x7   : > { %p137_p2 = scmp.eq.s32.totalorder %s2737_s18, 1  ;;  %p142_p3 = scmp.ne.s32.totalorder %s3510_s13, %s3506_s12 }
   0x8   : > { %s4150_s20 = smov (%p37_p0, %s35_s20), 0  ;;  %p143_p5 = scmp.eq.s32.totalorder %s2738_s19, 1 }
   0x9   : > { %p3591_p4 = por %p137_p2, %p136_p1  ;;  %s121_s23 = ssub.s32 %s3522_s16, %s4150_s20 }
   0xa   : > { %p2743_p6 = scmp.ge.s32.totalorder %s3526_s17, 1  ;;  %p124_p7 = scmp.eq.s32.totalorder %s121_s23, 0 }
   0xb   : > { %p3598_p8 = por %p143_p5, %p142_p3  ;;  %p184_p9 = scmp.lt.s32.totalorder %s3526_s17, 3 }
   0xc   : > { %s3604_s25 = scalar_select %p124_p7, %s3514_s14, %s126_s21  }
   0xd   : > { %p185_p10 = pnand %p2743_p6, %p184_p9 }
   0xf   : > { %188 = sbr.rel (%p185_p10) target bundleno = 368 (0x170), region = 32 }
  0x14   : > { %v2746_v0 = vld [vmem:[%s4119_s1 + $0x4] sm:$0xf]  ;;  %vm268_vm0 = vcmask 1043456   ;;  %v239_v1 = vld [vmem:[%s4119_s1] sm:$0xf]  ;;  %p217_p11 = scmp.lt.s32.totalorder %s3518_s15, 1 }
  0x15   : > { %3168 = vmatprep.subr.msk.mxu0 %vm268_vm0, %v2746_v0  ;;  %3182 = vmatprep.subr.msk.mxu1 %vm268_vm0, %v239_v1  ;;  %v2773_v2 = vld [vmem:[%s4119_s1 + $0x8] sm:$0xf]  ;;  %v2791_v3 = vld [vmem:[%s4119_s1 + $0xc] sm:$0xf]  ;;  %vm243_vm1 = vcmask 31744   ;;  %s3528_s21 = smov [#allocation2]  }
  0x16   : > { %3169 = vmatpush3.msk.msra.mxu0 %vm268_vm0, %v2746_v0  ;;  %s218_s7 = scalar_select %p217_p11, %s3518_s15, 1  ;;  %3183 = vmatpush3.msk.msra.mxu1 %vm268_vm0, %v239_v1  ;;  %v2809_v8 = vld [vmem:[%s4119_s1 + $0x10] sm:$0xf]  ;;  %v2827_v9 = vld [vmem:[%s4119_s1 + $0x14] sm:$0xf] }
  0x17   : > { %3196 = vmatprep.subr.msk.mxu0 %vm268_vm0, %v2773_v2  ;;  %3210 = vmatprep.subr.msk.mxu1 %vm268_vm0, %v2791_v3  ;;  %v2845_v19 = vld [vmem:[%s4119_s1 + $0x18] sm:$0xf]  ;;  %v2863_v20 = vld [vmem:[%s4119_s1 + $0x1c] sm:$0xf]  ;;  %v2881_v30 = vld [vmem:[%s4119_s1 + $0x20] sm:$0xf] }
  0x18   : > { %s3392_s8 = smul.u32 576, %s218_s7  ;;  %v2899_v31 = vld [vmem:[%s4119_s1 + $0x24] sm:$0xf]  ;;  %v2917_v41 = vld [vmem:[%s4119_s1 + $0x28] sm:$0xf]  ;;  %s3023_s7 = sshll.u32 %s3518_s15, 10 }
  0x19   : > { %v2935_v42 = vld [vmem:[%s4119_s1 + $0x2c] sm:$0xf]  ;;  %v2953_v52 = vld [vmem:[%s4119_s1 + $0x30] sm:$0xf]  ;;  %v2971_v53 = vld [vmem:[%s4119_s1 + $0x34] sm:$0xf]  ;;  %s4065_s18 = scalar_lea.hbm %s4121_s3, %s3023_s7 }
  0x1a   : > { %s3629_s11 = scalar_lea.vmem %s4118_s0, %s3392_s8  ;;  %v2989_v63 = vld [vmem:[%s4119_s1 + $0x38] sm:$0xf]  ;;  %v3007_v0 = vld [vmem:[%s4119_s1 + $0x3c] sm:$0xf]  ;;  %s3454_s23 = sshll.u32 %s3528_s21, 4  ;;  %s3455_s23 = int_to_ptr.vmem [resolvable:$false] %s3454_s23 }
  0x1b   : > { %v232_v4 = vld [vmem:[%s3629_s11 + $0x8] sm:$0xff]  ;;  %v231_v5 = vld [vmem:[%s3629_s11] sm:$0xff]  ;;  %v233_v6 = vld [vmem:[%s3629_s11 + $0x10] sm:$0xff]  ;;  %s3456_s26 = scalar_lea.vmem %s3455_s23, 2048 }
  0x1c   : > { %3170 = vmatprep.mubr.msk.f32.mxu0 %vm243_vm1, %v232_v4  ;;  %3184 = vmatprep.mubr.msk.f32.mxu1 %vm243_vm1, %v231_v5  ;;  %v234_v7 = vld [vmem:[%s3629_s11 + $0x18] sm:$0xff]  ;;  %v235_v10 = vld [vmem:[%s3629_s11 + $0x20] sm:$0xff]  ;;  %v236_v11 = vld [vmem:[%s3629_s11 + $0x28] sm:$0xff] }
  0x1d   : > { %3171 = vmatmul.mubr.msk.f32.vlgmr.msra.gmra.mxu0 %vm243_vm1, %v233_v6  ;;  %3185 = vmatmul.mubr.msk.f32.vlgmr.msra.gmra.mxu1 %vm243_vm1, %v232_v4  ;;  %v237_v12 = vld [vmem:[%s3629_s11 + $0x30] sm:$0xff]  ;;  %v238_v13 = vld [vmem:[%s3629_s11 + $0x38] sm:$0xff]  ;;  %v240_v14 = vld [vmem:[%s3629_s11 + $0x40] sm:$0xff] }
  0x1e   : > { %3197 = vmatpush3.msk.msra.mxu0 %vm268_vm0, %v2773_v2  ;;  %3211 = vmatpush3.msk.msra.mxu1 %vm268_vm0, %v2791_v3  ;;  %v2765_v15 = vld [vmem:[%s3629_s11 + $0x48] sm:$0xff]  ;;  %v2783_v16 = vld [vmem:[%s3629_s11 + $0x50] sm:$0xff]  ;;  %v2784_v17 = vld [vmem:[%s3629_s11 + $0x58] sm:$0xff] }
  0x1f   : > { %3173 = vmatprep.mubr.msk.f32.mxu0 %vm243_vm1, %v234_v7  ;;  %3187 = vmatprep.mubr.msk.f32.mxu1 %vm243_vm1, %v233_v6  ;;  %v2785_v18 = vld [vmem:[%s3629_s11 + $0x60] sm:$0xff]  ;;  %v2786_v21 = vld [vmem:[%s3629_s11 + $0x68] sm:$0xff]  ;;  %v2787_v22 = vld [vmem:[%s3629_s11 + $0x70] sm:$0xff] }
  0x20   : > { %3224 = vmatprep.subr.msk.mxu0 %vm268_vm0, %v2809_v8  ;;  %3238 = vmatprep.subr.msk.mxu1 %vm268_vm0, %v2827_v9  ;;  %v2788_v23 = vld [vmem:[%s3629_s11 + $0x78] sm:$0xff]  ;;  %v2789_v24 = vld [vmem:[%s3629_s11 + $0x80] sm:$0xff]  ;;  %v2790_v25 = vld [vmem:[%s3629_s11 + $0x88] sm:$0xff] }
  0x21   : > { %3174 = vmatmul.mubr.msk.f32.gmra.mxu0 %vm243_vm1, %v235_v10  ;;  %3188 = vmatmul.mubr.msk.f32.gmra.mxu1 %vm243_vm1, %v234_v7  ;;  %v2801_v26 = vld [vmem:[%s3629_s11 + $0x90] sm:$0xff]  ;;  %v2819_v27 = vld [vmem:[%s3629_s11 + $0x98] sm:$0xff]  ;;  %v2820_v28 = vld [vmem:[%s3629_s11 + $0xa0] sm:$0xff] }
  0x22   : > { %3176 = vmatprep.mubr.msk.f32.mxu0 %vm243_vm1, %v236_v11  ;;  %3190 = vmatprep.mubr.msk.f32.mxu1 %vm243_vm1, %v235_v10  ;;  %v2821_v29 = vld [vmem:[%s3629_s11 + $0xa8] sm:$0xff]  ;;  %v2822_v32 = vld [vmem:[%s3629_s11 + $0xb0] sm:$0xff]  ;;  %v2823_v33 = vld [vmem:[%s3629_s11 + $0xb8] sm:$0xff] }
  0x23   : > { %v2824_v34 = vld [vmem:[%s3629_s11 + $0xc0] sm:$0xff]  ;;  %v2825_v35 = vld [vmem:[%s3629_s11 + $0xc8] sm:$0xff]  ;;  %v2826_v36 = vld [vmem:[%s3629_s11 + $0xd0] sm:$0xff] }
  0x24   : > { %v2837_v37 = vld [vmem:[%s3629_s11 + $0xd8] sm:$0xff]  ;;  %v2855_v38 = vld [vmem:[%s3629_s11 + $0xe0] sm:$0xff]  ;;  %v2856_v39 = vld [vmem:[%s3629_s11 + $0xe8] sm:$0xff] }
  0x25   : > { %3177 = vmatmul.mubr.msk.f32.gmra.mxu0 %vm243_vm1, %v237_v12  ;;  %3191 = vmatmul.mubr.msk.f32.gmra.mxu1 %vm243_vm1, %v236_v11  ;;  %v2857_v40 = vld [vmem:[%s3629_s11 + $0xf0] sm:$0xff]  ;;  %v2858_v43 = vld [vmem:[%s3629_s11 + $0xf8] sm:$0xff]  ;;  %v2859_v44 = vld [vmem:[%s3629_s11 + $0x100] sm:$0xff] }
  0x26   : > { %3179 = vmatprep.mubr.msk.f32.mxu0 %vm243_vm1, %v238_v13  ;;  %3193 = vmatprep.mubr.msk.f32.mxu1 %vm243_vm1, %v237_v12  ;;  %v2860_v45 = vld [vmem:[%s3629_s11 + $0x108] sm:$0xff]  ;;  %v2861_v46 = vld [vmem:[%s3629_s11 + $0x110] sm:$0xff]  ;;  %v2862_v47 = vld [vmem:[%s3629_s11 + $0x118] sm:$0xff] }
  0x27   : > { %v2873_v48 = vld [vmem:[%s3629_s11 + $0x120] sm:$0xff]  ;;  %v2891_v49 = vld [vmem:[%s3629_s11 + $0x128] sm:$0xff]  ;;  %v2892_v50 = vld [vmem:[%s3629_s11 + $0x130] sm:$0xff] }
  0x28   : > { %v2893_v51 = vld [vmem:[%s3629_s11 + $0x138] sm:$0xff]  ;;  %v2894_v54 = vld [vmem:[%s3629_s11 + $0x140] sm:$0xff]  ;;  %v2895_v55 = vld [vmem:[%s3629_s11 + $0x148] sm:$0xff] }
  0x29   : > { %3180 = vmatmul.mubr.msk.f32.gmra.mxu0 %vm243_vm1, %v240_v14  ;;  %3194 = vmatmul.mubr.msk.f32.gmra.mxu1 %vm243_vm1, %v238_v13  ;;  %v2896_v56 = vld [vmem:[%s3629_s11 + $0x150] sm:$0xff]  ;;  %v2897_v57 = vld [vmem:[%s3629_s11 + $0x158] sm:$0xff]  ;;  %v2898_v58 = vld [vmem:[%s3629_s11 + $0x160] sm:$0xff] }
  0x2a   : > { %3198 = vmatprep.mubr.msk.f32.mxu0 %vm243_vm1, %v2765_v15  ;;  %3212 = vmatprep.mubr.msk.f32.mxu1 %vm243_vm1, %v2783_v16  ;;  %v2909_v59 = vld [vmem:[%s3629_s11 + $0x168] sm:$0xff]  ;;  %v2927_v60 = vld [vmem:[%s3629_s11 + $0x170] sm:$0xff]  ;;  %v2928_v61 = vld [vmem:[%s3629_s11 + $0x178] sm:$0xff] }
  0x2b   : > { %v2929_v62 = vld [vmem:[%s3629_s11 + $0x180] sm:$0xff]  ;;  %v2930_v1 = vld [vmem:[%s3629_s11 + $0x188] sm:$0xff]  ;;  %v2931_v2 = vld [vmem:[%s3629_s11 + $0x190] sm:$0xff] }
  0x2c   : > { %v2932_v3 = vld [vmem:[%s3629_s11 + $0x198] sm:$0xff]  ;;  %v2933_v4 = vld [vmem:[%s3629_s11 + $0x1a0] sm:$0xff]  ;;  %v2934_v5 = vld [vmem:[%s3629_s11 + $0x1a8] sm:$0xff] }
  0x2d   : > { %3199 = vmatmul.mubr.msk.f32.vlgmr.msra.gmra.mxu0 %vm243_vm1, %v2783_v16  ;;  %3213 = vmatmul.mubr.msk.f32.vlgmr.msra.gmra.mxu1 %vm243_vm1, %v2784_v17  ;;  %v2945_v6 = vld [vmem:[%s3629_s11 + $0x1b0] sm:$0xff]  ;;  %v2963_v7 = vld [vmem:[%s3629_s11 + $0x1b8] sm:$0xff]  ;;  %v2968_v12 = vld [vmem:[%s3629_s11 + $0x1e0] sm:$0xff] }
  0x2e   : > { %3225 = vmatpush3.msk.msra.mxu0 %vm268_vm0, %v2809_v8  ;;  %3239 = vmatpush3.msk.msra.mxu1 %vm268_vm0, %v2827_v9  ;;  %v2964_v8 = vld [vmem:[%s3629_s11 + $0x1c0] sm:$0xff]  ;;  %v2965_v9 = vld [vmem:[%s3629_s11 + $0x1c8] sm:$0xff]  ;;  %v2966_v10 = vld [vmem:[%s3629_s11 + $0x1d0] sm:$0xff] }
  0x2f   : > { %3201 = vmatprep.mubr.msk.f32.mxu0 %vm243_vm1, %v2784_v17  ;;  %3215 = vmatprep.mubr.msk.f32.mxu1 %vm243_vm1, %v2785_v18  ;;  %v2967_v11 = vld [vmem:[%s3629_s11 + $0x1d8] sm:$0xff]  ;;  %v2969_v13 = vld [vmem:[%s3629_s11 + $0x1e8] sm:$0xff]  ;;  %v2970_v14 = vld [vmem:[%s3629_s11 + $0x1f0] sm:$0xff] }
  0x30   : > { %3252 = vmatprep.subr.msk.mxu0 %vm268_vm0, %v2845_v19  ;;  %3266 = vmatprep.subr.msk.mxu1 %vm268_vm0, %v2863_v20  ;;  %v2981_v15 = vld [vmem:[%s3629_s11 + $0x1f8] sm:$0xff]  ;;  %v2999_v16 = vld [vmem:[%s3629_s11 + $0x200] sm:$0xff]  ;;  %v3000_v17 = vld [vmem:[%s3629_s11 + $0x208] sm:$0xff] }
  0x31   : > { %3202 = vmatmul.mubr.msk.f32.gmra.mxu0 %vm243_vm1, %v2785_v18  ;;  %3216 = vmatmul.mubr.msk.f32.gmra.mxu1 %vm243_vm1, %v2786_v21  ;;  %v3001_v18 = vld [vmem:[%s3629_s11 + $0x210] sm:$0xff] }
  0x32   : > { %3204 = vmatprep.mubr.msk.f32.mxu0 %vm243_vm1, %v2786_v21  ;;  %3218 = vmatprep.mubr.msk.f32.mxu1 %vm243_vm1, %v2787_v22  ;;  %v3004_v21 = vld [vmem:[%s3629_s11 + $0x228] sm:$0xff] }
  0x35   : > { %3205 = vmatmul.mubr.msk.f32.gmra.mxu0 %vm243_vm1, %v2787_v22  ;;  %3219 = vmatmul.mubr.msk.f32.gmra.mxu1 %vm243_vm1, %v2788_v23  ;;  %v3005_v22 = vld [vmem:[%s3629_s11 + $0x230] sm:$0xff] }
  0x36   : > { %3207 = vmatprep.mubr.msk.f32.mxu0 %vm243_vm1, %v2788_v23  ;;  %3221 = vmatprep.mubr.msk.f32.mxu1 %vm243_vm1, %v2789_v24  ;;  %v3006_v23 = vld [vmem:[%s3629_s11 + $0x238] sm:$0xff] }
  0x39   : > { %3208 = vmatmul.mubr.msk.f32.gmra.mxu0 %vm243_vm1, %v2789_v24  ;;  %3222 = vmatmul.mubr.msk.f32.gmra.mxu1 %vm243_vm1, %v2790_v25 }
  0x3a   : > { %3226 = vmatprep.mubr.msk.f32.mxu0 %vm243_vm1, %v2801_v26  ;;  %3240 = vmatprep.mubr.msk.f32.mxu1 %vm243_vm1, %v2819_v27 }
  0x3d   : > { %3227 = vmatmul.mubr.msk.f32.vlgmr.msra.gmra.mxu0 %vm243_vm1, %v2819_v27  ;;  %3241 = vmatmul.mubr.msk.f32.vlgmr.msra.gmra.mxu1 %vm243_vm1, %v2820_v28 }
  0x3e   : > { %3253 = vmatpush3.msk.msra.mxu0 %vm268_vm0, %v2845_v19  ;;  %3267 = vmatpush3.msk.msra.mxu1 %vm268_vm0, %v2863_v20  ;;  %v3002_v19 = vld [vmem:[%s3629_s11 + $0x218] sm:$0xff]  ;;  %v3003_v20 = vld [vmem:[%s3629_s11 + $0x220] sm:$0xff]  ;;  %s213_s11 = sand.u32 1, %s3510_s13  }
  0x3f   : > { %3229 = vmatprep.mubr.msk.f32.mxu0 %vm243_vm1, %v2820_v28  ;;  %3243 = vmatprep.mubr.msk.f32.mxu1 %vm243_vm1, %v2821_v29  ;;  %s2744_s30 = sshll.u32 %s213_s11, 6  ;;  %s4073_s15 = scalar_lea.sflag [#allocation3], %s213_s11 }
  0x40   : > { %3280 = vmatprep.subr.msk.mxu0 %vm268_vm0, %v2881_v30  ;;  %3294 = vmatprep.subr.msk.mxu1 %vm268_vm0, %v2899_v31  ;;  %s4052_s6 = scalar_lea.vmem [#allocation2], %s2744_s30 }
  0x41   : > { %3230 = vmatmul.mubr.msk.f32.gmra.mxu0 %vm243_vm1, %v2821_v29  ;;  %3244 = vmatmul.mubr.msk.f32.gmra.mxu1 %vm243_vm1, %v2822_v32  ;;  %s2634_s8 = sshll.u32 %s4052_s6, 4  ;;  %s4067_s8 = int_to_ptr.vmem [resolvable:$true] %s2634_s8 }
  0x42   : > { %3232 = vmatprep.mubr.msk.f32.mxu0 %vm243_vm1, %v2822_v32  ;;  %3246 = vmatprep.mubr.msk.f32.mxu1 %vm243_vm1, %v2823_v33  ;;  %s3450_s19 = scalar_lea.vmem %s4067_s8, 1024  ;;  %p3457_p1 = scmp.lt.s32.totalorder %s4067_s8, %s3455_s23 }
  0x43   : > { %p3451_p12 = scmp.ne.s32.totalorder %s4067_s8, %s3450_s19  ;;  %p3458_p2 = scmp.lt.s32.totalorder %s3456_s26, %s3450_s19 }
  0x45   : > { %3233 = vmatmul.mubr.msk.f32.gmra.mxu0 %vm243_vm1, %v2823_v33  ;;  %3247 = vmatmul.mubr.msk.f32.gmra.mxu1 %vm243_vm1, %v2824_v34  ;;  %p3452_p13 = pnand %p3451_p12, %p3591_p4  ;;  %p3459_p3 = por %p3458_p2, %p3457_p1 }
  0x46   : > { %3235 = vmatprep.mubr.msk.f32.mxu0 %vm243_vm1, %v2824_v34  ;;  %3249 = vmatprep.mubr.msk.f32.mxu1 %vm243_vm1, %v2825_v35 }
  0x47   : > { %p3453_p0 = pneg %p3452_p13 }
  0x49   : > { %3236 = vmatmul.mubr.msk.f32.gmra.mxu0 %vm243_vm1, %v2825_v35  ;;  %3250 = vmatmul.mubr.msk.f32.gmra.mxu1 %vm243_vm1, %v2826_v36  ;;  %p3460_p5 = pnand %p3459_p3, %p3453_p0 }
  0x4a   : > { %3254 = vmatprep.mubr.msk.f32.mxu0 %vm243_vm1, %v2837_v37  ;;  %3268 = vmatprep.mubr.msk.f32.mxu1 %vm243_vm1, %v2855_v38 }
  0x4d   : > { %3255 = vmatmul.mubr.msk.f32.vlgmr.msra.gmra.mxu0 %vm243_vm1, %v2855_v38  ;;  %3269 = vmatmul.mubr.msk.f32.vlgmr.msra.gmra.mxu1 %vm243_vm1, %v2856_v39 }
  0x4e   : > { %3281 = vmatpush3.msk.msra.mxu0 %vm268_vm0, %v2881_v30  ;;  %3295 = vmatpush3.msk.msra.mxu1 %vm268_vm0, %v2899_v31 }
  0x4f   : > { %3257 = vmatprep.mubr.msk.f32.mxu0 %vm243_vm1, %v2856_v39  ;;  %3271 = vmatprep.mubr.msk.f32.mxu1 %vm243_vm1, %v2857_v40 }
  0x50   : > { %3308 = vmatprep.subr.msk.mxu0 %vm268_vm0, %v2917_v41  ;;  %3322 = vmatprep.subr.msk.mxu1 %vm268_vm0, %v2935_v42 }
  0x51   : > { %3258 = vmatmul.mubr.msk.f32.gmra.mxu0 %vm243_vm1, %v2857_v40  ;;  %3272 = vmatmul.mubr.msk.f32.gmra.mxu1 %vm243_vm1, %v2858_v43 }
  0x52   : > { %3260 = vmatprep.mubr.msk.f32.mxu0 %vm243_vm1, %v2858_v43  ;;  %3274 = vmatprep.mubr.msk.f32.mxu1 %vm243_vm1, %v2859_v44 }
  0x55   : > { %3261 = vmatmul.mubr.msk.f32.gmra.mxu0 %vm243_vm1, %v2859_v44  ;;  %3275 = vmatmul.mubr.msk.f32.gmra.mxu1 %vm243_vm1, %v2860_v45 }
  0x56   : > { %3263 = vmatprep.mubr.msk.f32.mxu0 %vm243_vm1, %v2860_v45  ;;  %3277 = vmatprep.mubr.msk.f32.mxu1 %vm243_vm1, %v2861_v46 }
  0x59   : > { %3264 = vmatmul.mubr.msk.f32.gmra.mxu0 %vm243_vm1, %v2861_v46  ;;  %3278 = vmatmul.mubr.msk.f32.gmra.mxu1 %vm243_vm1, %v2862_v47 }
  0x5a   : > { %3282 = vmatprep.mubr.msk.f32.mxu0 %vm243_vm1, %v2873_v48  ;;  %3296 = vmatprep.mubr.msk.f32.mxu1 %vm243_vm1, %v2891_v49 }
  0x5d   : > { %3283 = vmatmul.mubr.msk.f32.vlgmr.msra.gmra.mxu0 %vm243_vm1, %v2891_v49  ;;  %3297 = vmatmul.mubr.msk.f32.vlgmr.msra.gmra.mxu1 %vm243_vm1, %v2892_v50 }
  0x5e   : > { %3309 = vmatpush3.msk.msra.mxu0 %vm268_vm0, %v2917_v41  ;;  %3323 = vmatpush3.msk.msra.mxu1 %vm268_vm0, %v2935_v42 }
  0x5f   : > { %3285 = vmatprep.mubr.msk.f32.mxu0 %vm243_vm1, %v2892_v50  ;;  %3299 = vmatprep.mubr.msk.f32.mxu1 %vm243_vm1, %v2893_v51 }
  0x60   : > { %3336 = vmatprep.subr.msk.mxu0 %vm268_vm0, %v2953_v52  ;;  %3350 = vmatprep.subr.msk.mxu1 %vm268_vm0, %v2971_v53 }
  0x61   : > { %3286 = vmatmul.mubr.msk.f32.gmra.mxu0 %vm243_vm1, %v2893_v51  ;;  %3300 = vmatmul.mubr.msk.f32.gmra.mxu1 %vm243_vm1, %v2894_v54 }
  0x62   : > { %3288 = vmatprep.mubr.msk.f32.mxu0 %vm243_vm1, %v2894_v54  ;;  %3302 = vmatprep.mubr.msk.f32.mxu1 %vm243_vm1, %v2895_v55 }
  0x65   : > { %3289 = vmatmul.mubr.msk.f32.gmra.mxu0 %vm243_vm1, %v2895_v55  ;;  %3303 = vmatmul.mubr.msk.f32.gmra.mxu1 %vm243_vm1, %v2896_v56 }
  0x66   : > { %3291 = vmatprep.mubr.msk.f32.mxu0 %vm243_vm1, %v2896_v56  ;;  %3305 = vmatprep.mubr.msk.f32.mxu1 %vm243_vm1, %v2897_v57 }
  0x69   : > { %3292 = vmatmul.mubr.msk.f32.gmra.mxu0 %vm243_vm1, %v2897_v57  ;;  %3306 = vmatmul.mubr.msk.f32.gmra.mxu1 %vm243_vm1, %v2898_v58 }
  0x6a   : > { %3310 = vmatprep.mubr.msk.f32.mxu0 %vm243_vm1, %v2909_v59  ;;  %3324 = vmatprep.mubr.msk.f32.mxu1 %vm243_vm1, %v2927_v60 }
  0x6d   : > { %3311 = vmatmul.mubr.msk.f32.vlgmr.msra.gmra.mxu0 %vm243_vm1, %v2927_v60  ;;  %3325 = vmatmul.mubr.msk.f32.vlgmr.msra.gmra.mxu1 %vm243_vm1, %v2928_v61 }
  0x6e   : > { %3337 = vmatpush3.msk.msra.mxu0 %vm268_vm0, %v2953_v52  ;;  %3351 = vmatpush3.msk.msra.mxu1 %vm268_vm0, %v2971_v53 }
  0x6f   : > { %3313 = vmatprep.mubr.msk.f32.mxu0 %vm243_vm1, %v2928_v61  ;;  %3327 = vmatprep.mubr.msk.f32.mxu1 %vm243_vm1, %v2929_v62 }
  0x70   : > { %3364 = vmatprep.subr.msk.mxu0 %vm268_vm0, %v2989_v63  ;;  %3378 = vmatprep.subr.msk.mxu1 %vm268_vm0, %v3007_v0 }
  0x71   : > { %3314 = vmatmul.mubr.msk.f32.gmra.mxu0 %vm243_vm1, %v2929_v62  ;;  %3328 = vmatmul.mubr.msk.f32.gmra.mxu1 %vm243_vm1, %v2930_v1 }
  0x72   : > { %3316 = vmatprep.mubr.msk.f32.mxu0 %vm243_vm1, %v2930_v1  ;;  %3330 = vmatprep.mubr.msk.f32.mxu1 %vm243_vm1, %v2931_v2 }
  0x75   : > { %3317 = vmatmul.mubr.msk.f32.gmra.mxu0 %vm243_vm1, %v2931_v2  ;;  %3331 = vmatmul.mubr.msk.f32.gmra.mxu1 %vm243_vm1, %v2932_v3 }
  0x76   : > { %3319 = vmatprep.mubr.msk.f32.mxu0 %vm243_vm1, %v2932_v3  ;;  %3333 = vmatprep.mubr.msk.f32.mxu1 %vm243_vm1, %v2933_v4 }
  0x79   : > { %3320 = vmatmul.mubr.msk.f32.gmra.mxu0 %vm243_vm1, %v2933_v4  ;;  %3334 = vmatmul.mubr.msk.f32.gmra.mxu1 %vm243_vm1, %v2934_v5 }
  0x7a   : > { %3338 = vmatprep.mubr.msk.f32.mxu0 %vm243_vm1, %v2945_v6  ;;  %3352 = vmatprep.mubr.msk.f32.mxu1 %vm243_vm1, %v2963_v7 }
  0x7d   : > { %3339 = vmatmul.mubr.msk.f32.vlgmr.msra.gmra.mxu0 %vm243_vm1, %v2963_v7  ;;  %3353 = vmatmul.mubr.msk.f32.vlgmr.msra.gmra.mxu1 %vm243_vm1, %v2964_v8 }
  0x7e   : > { %3365 = vmatpush3.msk.msra.mxu0 %vm268_vm0, %v2989_v63  ;;  %3379 = vmatpush3.msk.msra.mxu1 %vm268_vm0, %v3007_v0 }
  0x7f   : > { %3341 = vmatprep.mubr.msk.f32.mxu0 %vm243_vm1, %v2964_v8  ;;  %3355 = vmatprep.mubr.msk.f32.mxu1 %vm243_vm1, %v2965_v9 }
  0x81   : > { %3342 = vmatmul.mubr.msk.f32.gmra.mxu0 %vm243_vm1, %v2965_v9  ;;  %3356 = vmatmul.mubr.msk.f32.gmra.mxu1 %vm243_vm1, %v2966_v10 }
  0x82   : > { %3344 = vmatprep.mubr.msk.f32.mxu0 %vm243_vm1, %v2966_v10  ;;  %3358 = vmatprep.mubr.msk.f32.mxu1 %vm243_vm1, %v2967_v11 }
  0x85   : > { %3345 = vmatmul.mubr.msk.f32.gmra.mxu0 %vm243_vm1, %v2967_v11  ;;  %3359 = vmatmul.mubr.msk.f32.gmra.mxu1 %vm243_vm1, %v2968_v12 }
  0x86   : > { %3347 = vmatprep.mubr.msk.f32.mxu0 %vm243_vm1, %v2968_v12  ;;  %3361 = vmatprep.mubr.msk.f32.mxu1 %vm243_vm1, %v2969_v13 }
  0x89   : > { %3348 = vmatmul.mubr.msk.f32.gmra.mxu0 %vm243_vm1, %v2969_v13  ;;  %3362 = vmatmul.mubr.msk.f32.gmra.mxu1 %vm243_vm1, %v2970_v14 }
  0x8a   : > { %3366 = vmatprep.mubr.msk.f32.mxu0 %vm243_vm1, %v2981_v15  ;;  %3380 = vmatprep.mubr.msk.f32.mxu1 %vm243_vm1, %v2999_v16 }
  0x8d   : > { %3367 = vmatmul.mubr.msk.f32.vlgmr.msra.gmra.mxu0 %vm243_vm1, %v2999_v16  ;;  %3381 = vmatmul.mubr.msk.f32.vlgmr.msra.gmra.mxu1 %vm243_vm1, %v3000_v17 }
  0x8e   : > { %3369 = vmatprep.mubr.msk.f32.mxu0 %vm243_vm1, %v3000_v17  ;;  %3383 = vmatprep.mubr.msk.f32.mxu1 %vm243_vm1, %v3001_v18 }
  0x91   : > { %3370 = vmatmul.mubr.msk.f32.gmra.mxu0 %vm243_vm1, %v3001_v18  ;;  %3384 = vmatmul.mubr.msk.f32.gmra.mxu1 %vm243_vm1, %v3002_v19 }
  0x92   : > { %3372 = vmatprep.mubr.msk.f32.mxu0 %vm243_vm1, %v3002_v19  ;;  %3386 = vmatprep.mubr.msk.f32.mxu1 %vm243_vm1, %v3003_v20 }
  0x95   : > { %3373 = vmatmul.mubr.msk.f32.gmra.mxu0 %vm243_vm1, %v3003_v20  ;;  %3387 = vmatmul.mubr.msk.f32.gmra.mxu1 %vm243_vm1, %v3004_v21 }
  0x96   : > { %3375 = vmatprep.mubr.msk.f32.mxu0 %vm243_vm1, %v3004_v21  ;;  %3389 = vmatprep.mubr.msk.f32.mxu1 %vm243_vm1, %v3005_v22 }
  0x99   : > { %3376 = vmatmul.mubr.msk.f32.gmra.mxu0 %vm243_vm1, %v3005_v22  ;;  %3390 = vmatmul.mubr.msk.f32.gmra.mxu1 %vm243_vm1, %v3006_v23 }
  0xdd   : > { %v3172_v24 = vpop.f32.mrf.mxu0  ;;  %v3186_v25 = vpop.f32.mrf.mxu1 }
  0xde   : > { %v455_v26 = vadd.f32 %v3186_v25, %v3172_v24 }
  0xdf   : > { %v338_v27 = vpop.f32.mrf.mxu0  ;;  %v449_v28 = vpop.f32.mrf.mxu1 }
  0xe0   : > { %v450_v29 = vadd.f32 %v449_v28, %v338_v27 }
  0xe1   : > { %v3175_v30 = vpop.f32.mrf.mxu0  ;;  %v3189_v31 = vpop.f32.mrf.mxu1 }
  0xe2   : > { %v465_v32 = vadd.f32 %v3189_v31, %v3175_v30 }
  0xe3   : > { %v348_v33 = vpop.f32.mrf.mxu0  ;;  %v459_v34 = vpop.f32.mrf.mxu1 }
  0xe4   : > { %v460_v35 = vadd.f32 %v459_v34, %v348_v33 }
  0xe5   : > { %v3178_v36 = vpop.f32.mrf.mxu0  ;;  %v3192_v37 = vpop.f32.mrf.mxu1 }
  0xe6   : > { %v475_v38 = vadd.f32 %v3192_v37, %v3178_v36 }
  0xe7   : > { %v358_v39 = vpop.f32.mrf.mxu0  ;;  %v469_v40 = vpop.f32.mrf.mxu1 }
  0xe8   : > { %v470_v41 = vadd.f32 %v469_v40, %v358_v39 }
  0xe9   : > { %v3181_v42 = vpop.f32.mrf.mxu0  ;;  %v3195_v43 = vpop.f32.mrf.mxu1 }
  0xea   : > { %v485_v44 = vadd.f32 %v3195_v43, %v3181_v42 }
  0xeb   : > { %v368_v45 = vpop.f32.mrf.mxu0  ;;  %v479_v46 = vpop.f32.mrf.mxu1 }
  0xec   : > { %v480_v47 = vadd.f32 %v479_v46, %v368_v45 }
  0xed   : > { %v3200_v48 = vpop.f32.mrf.mxu0  ;;  %v3214_v49 = vpop.f32.mrf.mxu1 }
  0xee   : > { %v632_v50 = vadd.f32 %v3200_v48, %v455_v26 }
  0xef   : > { %v592_v51 = vpop.f32.mrf.mxu0  ;;  %v742_v52 = vpop.f32.mrf.mxu1 }
  0xf0   : > { %v3893_v53 = vadd.f32 %v3214_v49, %v632_v50  ;;  %v631_v54 = vadd.f32 %v592_v51, %v450_v29 }
  0xf1   : > { %v3203_v55 = vpop.f32.mrf.mxu0  ;;  %v3217_v56 = vpop.f32.mrf.mxu1 }
  0xf2   : > { %v3895_v57 = vadd.f32 %v742_v52, %v631_v54  ;;  %v634_v58 = vadd.f32 %v3203_v55, %v465_v32 }
  0xf3   : > { %v602_v59 = vpop.f32.mrf.mxu0  ;;  %v752_v60 = vpop.f32.mrf.mxu1 }
  0xf4   : > { %v3897_v61 = vadd.f32 %v3217_v56, %v634_v58  ;;  %v633_v62 = vadd.f32 %v602_v59, %v460_v35 }
  0xf5   : > { %v3206_v63 = vpop.f32.mrf.mxu0  ;;  %v3220_v0 = vpop.f32.mrf.mxu1 }
  0xf6   : > { %v3899_v1 = vadd.f32 %v752_v60, %v633_v62  ;;  %v636_v2 = vadd.f32 %v3206_v63, %v475_v38 }
  0xf7   : > { %v612_v3 = vpop.f32.mrf.mxu0  ;;  %v762_v4 = vpop.f32.mrf.mxu1 }
  0xf8   : > { %v3901_v5 = vadd.f32 %v3220_v0, %v636_v2  ;;  %v635_v6 = vadd.f32 %v612_v3, %v470_v41 }
  0xf9   : > { %v3209_v7 = vpop.f32.mrf.mxu0  ;;  %v3223_v8 = vpop.f32.mrf.mxu1 }
  0xfa   : > { %v3903_v9 = vadd.f32 %v762_v4, %v635_v6  ;;  %v638_v10 = vadd.f32 %v3209_v7, %v485_v44 }
  0xfb   : > { %v622_v11 = vpop.f32.mrf.mxu0  ;;  %v772_v12 = vpop.f32.mrf.mxu1 }
  0xfc   : > { %v3905_v13 = vadd.f32 %v3223_v8, %v638_v10  ;;  %v637_v14 = vadd.f32 %v622_v11, %v480_v47 }
  0xfd   : > { %v3228_v15 = vpop.f32.mrf.mxu0  ;;  %v3242_v16 = vpop.f32.mrf.mxu1 }
  0xfe   : > { %v3907_v17 = vadd.f32 %v772_v12, %v637_v14  ;;  %v933_v10 = vadd.f32 %v3228_v15, %v3893_v53 }
  0xff   : > { %v893_v18 = vpop.f32.mrf.mxu0  ;;  %v1043_v19 = vpop.f32.mrf.mxu1 }
 0x100   : > { %v932_v14 = vadd.f32 %v893_v18, %v3895_v57 }
 0x101   : > { %v3231_v20 = vpop.f32.mrf.mxu0  ;;  %v3909_v21 = vpop.f32.mrf.mxu1 }
 0x103   : > { %v903_v22 = vpop.f32.mrf.mxu0  ;;  %v3911_v23 = vpop.f32.mrf.mxu1 }
 0x104   : > { %v934_v53 = vadd.f32 %v903_v22, %v3899_v1 }
 0x105   : > { %v3234_v24 = vpop.f32.mrf.mxu0  ;;  %v3913_v25 = vpop.f32.mrf.mxu1 }
 0x107   : > { %v913_v26 = vpop.f32.mrf.mxu0  ;;  %v3915_v27 = vpop.f32.mrf.mxu1 }
 0x109   : > { %v3917_v28 = vpop.f32.mrf.mxu0  ;;  %v3919_v29 = vpop.f32.mrf.mxu1 }
 0x10b   : > { %v3921_v30 = vpop.f32.mrf.mxu0  ;;  %v3923_v31 = vpop.f32.mrf.mxu1 }
 0x10d   : > { %v3256_v32 = vpop.f32.mrf.mxu0  ;;  %v3270_v33 = vpop.f32.mrf.mxu1 }
 0x10f   : > { %v1194_v34 = vpop.f32.mrf.mxu0  ;;  %v1344_v35 = vpop.f32.mrf.mxu1 }
 0x111   : > { %v3259_v36 = vpop.f32.mrf.mxu0  ;;  %v3925_v37 = vpop.f32.mrf.mxu1 }
 0x113   : > { %v1204_v38 = vpop.f32.mrf.mxu0  ;;  %v3927_v39 = vpop.f32.mrf.mxu1 }
 0x115   : > { %v3262_v40 = vpop.f32.mrf.mxu0  ;;  %v3929_v41 = vpop.f32.mrf.mxu1 }
 0x117   : > { %v3931_v42 = vpop.f32.mrf.mxu0  ;;  %v3933_v43 = vpop.f32.mrf.mxu1 }
 0x119   : > { %v3935_v44 = vpop.f32.mrf.mxu0  ;;  %v3937_v45 = vpop.f32.mrf.mxu1 }
 0x11b   : > { %v3939_v46 = vpop.f32.mrf.mxu0  ;;  %v3941_v47 = vpop.f32.mrf.mxu1 }
 0x11c   : > { %4124 = vst [vmem:[#allocation5_spill] sm:$0xff] %v3941_v47  ;;  %v937_v47 = vadd.f32 %v3234_v24, %v3901_v5  ;;  %v939_v5 = vadd.f32 %v3917_v28, %v3905_v13 }
 0x11d   : > { %v3284_v48 = vpop.f32.mrf.mxu0  ;;  %v3298_v49 = vpop.f32.mrf.mxu1 }
 0x11e   : > { %v1087_v22 = vadd.f32 %v3913_v25, %v937_v47  ;;  %v1089_v13 = vadd.f32 %v3919_v29, %v939_v5 }
 0x11f   : > { %v1495_v50 = vpop.f32.mrf.mxu0  ;;  %v3943_v51 = vpop.f32.mrf.mxu1 }
 0x121   : > { %v3287_v52 = vpop.f32.mrf.mxu0  ;;  %v3945_v54 = vpop.f32.mrf.mxu1 }
 0x123   : > { %v3947_v55 = vpop.f32.mrf.mxu0  ;;  %v3949_v56 = vpop.f32.mrf.mxu1 }
 0x125   : > { %v3951_v58 = vpop.f32.mrf.mxu0  ;;  %v3953_v59 = vpop.f32.mrf.mxu1 }
 0x126   : > { %4125 = vst [vmem:[#allocation6_spill] sm:$0xff] %v3953_v59 }
 0x127   : > { %v3955_v60 = vpop.f32.mrf.mxu0  ;;  %v3957_v62 = vpop.f32.mrf.mxu1 }
 0x128   : > { %4126 = vst [vmem:[#allocation7_spill] sm:$0xff] %v3957_v62 }
 0x129   : > { %v3959_v63 = vpop.f32.mrf.mxu0  ;;  %v3961_v0 = vpop.f32.mrf.mxu1 }
 0x12a   : > { %4127 = vst [vmem:[#allocation8_spill] sm:$0xff] %v3959_v63  ;;  %4128 = vst [vmem:[#allocation9_spill] sm:$0xff] %v3961_v0 }
 0x12b   : > { %v3963_v2 = vpop.f32.mrf.mxu0  ;;  %v3965_v3 = vpop.f32.mrf.mxu1 }
 0x12c   : > { %4129 = vst [vmem:[#allocation10_spill] sm:$0xff] %v3963_v2  ;;  %4130 = vst [vmem:[#allocation11_spill] sm:$0xff] %v3965_v3  ;;  %v1083_v2 = vadd.f32 %v3242_v16, %v933_v10  ;;  %v935_v3 = vadd.f32 %v3231_v20, %v3897_v61  ;;  %v936_v16 = vadd.f32 %v913_v26, %v3903_v9 }
 0x12d   : > { %v3312_v4 = vpop.f32.mrf.mxu0  ;;  %v3967_v6 = vpop.f32.mrf.mxu1 }
 0x12e   : > { %v1234_v15 = vadd.f32 %v3256_v32, %v1083_v2  ;;  %v1085_v18 = vadd.f32 %v3909_v21, %v935_v3  ;;  %v1086_v26 = vadd.f32 %v3915_v27, %v936_v16  ;;  %v938_v2 = vadd.f32 %v3921_v30, %v3907_v17 }
 0x12f   : > { %v1796_v7 = vpop.f32.mrf.mxu0  ;;  %v3969_v8 = vpop.f32.mrf.mxu1  ;;  %v1240_v30 = vadd.f32 %v3935_v44, %v1089_v13  ;;  %v4138_v5 = vld [vmem:[#allocation7_spill] sm:$0xff] }
 0x130   : > { %4131 = vst [vmem:[#allocation12_spill] sm:$0xff] %v3969_v8  ;;  %v1082_v8 = vadd.f32 %v1043_v19, %v932_v14  ;;  %v1084_v19 = vadd.f32 %v3911_v23, %v934_v53  ;;  %v1384_v10 = vadd.f32 %v3270_v33, %v1234_v15  ;;  %v1236_v1 = vadd.f32 %v3259_v36, %v1085_v18 }
 0x131   : > { %v3972_v11 = vpop.f32.mrf.mxu0  ;;  %v3974_v12 = vpop.f32.mrf.mxu1  ;;  %v1238_v23 = vadd.f32 %v3262_v40, %v1087_v22  ;;  %v1237_v28 = vadd.f32 %v3931_v42, %v1086_v26  ;;  %v1088_v27 = vadd.f32 %v3923_v31, %v938_v2  ;;  %v1390_v44 = vadd.f32 %v3937_v45, %v1240_v30 }
 0x132   : > { %4132 = vst [vmem:[#allocation13_spill] sm:$0xff] %v3974_v12  ;;  %v1535_v9 = vadd.f32 %v3284_v48, %v1384_v10  ;;  %v1386_v25 = vadd.f32 %v3925_v37, %v1236_v1 }
 0x133   : > { %v3977_v62 = vpop.f32.mrf.mxu0  ;;  %v3979_v0 = vpop.f32.mrf.mxu1  ;;  %v1388_v17 = vadd.f32 %v3929_v41, %v1238_v23  ;;  %v1387_v42 = vadd.f32 %v3933_v43, %v1237_v28  ;;  %v1239_v14 = vadd.f32 %v3939_v46, %v1088_v27  ;;  %v4134_v46 = vld [vmem:[#allocation5_spill] sm:$0xff]  ;;  %v4143_v27 = vld [vmem:[#allocation11_spill] sm:$0xff] }
 0x134   : > { %4133 = vst [vmem:[#allocation14_spill] sm:$0xff] %v3979_v0  ;;  %v1233_v0 = vadd.f32 %v1194_v34, %v1082_v8  ;;  %v1235_v34 = vadd.f32 %v1204_v38, %v1084_v19  ;;  %v1685_v38 = vadd.f32 %v3298_v49, %v1535_v9  ;;  %v1537_v48 = vadd.f32 %v3287_v52, %v1386_v25  ;;  %v4136_v19 = vld [vmem:[#allocation8_spill] sm:$0xff]  ;;  %v4141_v25 = vld [vmem:[#allocation9_spill] sm:$0xff] }
 0x135   : > { %v3982_v63 = vpop.f32.mrf.mxu0  ;;  %v3984_v59 = vpop.f32.mrf.mxu1  ;;  %v1538_v53 = vadd.f32 %v3955_v60, %v1387_v42  ;;  %v1389_v18 = vadd.f32 %v4134_v46, %v1239_v14  ;;  %v1541_v10 = vadd.f32 %v4136_v19, %v1390_v44 }
 0x136   : > { %v1383_v21 = vadd.f32 %v1344_v35, %v1233_v0  ;;  %v1385_v35 = vadd.f32 %v3927_v39, %v1235_v34  ;;  %v1539_v39 = vadd.f32 %v3951_v58, %v1388_v17  ;;  %v1687_v31 = vadd.f32 %v3945_v54, %v1537_v48  ;;  %v4135_v58 = vld [vmem:[#allocation6_spill] sm:$0xff] }
 0x137   : > { %v3988_v12 = vpop.f32.mrf.mxu0  ;;  %v3990_v57 = vpop.f32.mrf.mxu1  ;;  %v4137_v45 = vld [vmem:[#allocation12_spill] sm:$0xff] }
 0x138   : > { %v1534_v47 = vadd.f32 %v1495_v50, %v1383_v21  ;;  %v1536_v29 = vadd.f32 %v3947_v55, %v1385_v35  ;;  %v1836_v50 = vadd.f32 %v3312_v4, %v1685_v38  ;;  %v1838_v43 = vadd.f32 %v3972_v11, %v1687_v31  ;;  %v4139_v21 = vld [vmem:[#allocation10_spill] sm:$0xff] }
 0x139   : > { %v3994_v61 = vpop.f32.mrf.mxu0  ;;  %v3996_v20 = vpop.f32.mrf.mxu1  ;;  %v1689_v16 = vadd.f32 %v4135_v58, %v1539_v39  ;;  %v4140_v26 = vld [vmem:[#allocation13_spill] sm:$0xff] }
 0x13a   : > { %v1684_v37 = vadd.f32 %v3943_v51, %v1534_v47  ;;  %v1686_v55 = vadd.f32 %v3949_v56, %v1536_v29  ;;  %v1986_v4 = vadd.f32 %v3967_v6, %v1836_v50  ;;  %v1688_v56 = vadd.f32 %v4138_v5, %v1538_v53 }
 0x13b   : > { %v4002_v24 = vpop.f32.mrf.mxu0  ;;  %v4004_v32 = vpop.f32.mrf.mxu1  ;;  %v1540_v6 = vadd.f32 %v4139_v21, %v1389_v18  ;;  %v1840_v11 = vadd.f32 %v3982_v63, %v1689_v16  ;;  %v1988_v2 = vadd.f32 %v4140_v26, %v1838_v43  ;;  %v1691_v47 = vadd.f32 %v4141_v25, %v1541_v10 }
 0x13c   : > { %v1835_v41 = vadd.f32 %v1796_v7, %v1684_v37  ;;  %v1837_v60 = vadd.f32 %v3977_v62, %v1686_v55  ;;  %v1839_v13 = vadd.f32 %v3988_v12, %v1688_v56  ;;  %v4142_v62 = vld [vmem:[#allocation14_spill] sm:$0xff] }
 0x13d   : > { %v3340_v33 = vpop.f32.mrf.mxu0  ;;  %v3354_v36 = vpop.f32.mrf.mxu1  ;;  %v1690_v17 = vadd.f32 %v4143_v27, %v1540_v6  ;;  %v1990_v63 = vadd.f32 %v3984_v59, %v1840_v11  ;;  %v1842_v30 = vadd.f32 %v3994_v61, %v1691_v47 }
 0x13e   : > { %v1985_v1 = vadd.f32 %v4137_v45, %v1835_v41  ;;  %v2137_v22 = vadd.f32 %v3340_v33, %v1986_v4  ;;  %v1987_v33 = vadd.f32 %v4142_v62, %v1837_v60  ;;  %v1989_v12 = vadd.f32 %v3990_v57, %v1839_v13 }
 0x13f   : > { %v2097_v3 = vpop.f32.mrf.mxu0  ;;  %v2247_v8 = vpop.f32.mrf.mxu1  ;;  %v1841_v14 = vadd.f32 %v4002_v24, %v1690_v17 }
 0x140   : > { %v2136_v23 = vadd.f32 %v2097_v3, %v1985_v1  ;;  %v2287_v38 = vadd.f32 %v3354_v36, %v2137_v22  ;;  %v3017_v36 = vld [vmem:[%s4120_s2] ss:$0 sm:$0xff] }
 0x141   : > { %v3343_v40 = vpop.f32.mrf.mxu0  ;;  %v3357_v0 = vpop.f32.mrf.mxu1  ;;  %v1991_v24 = vadd.f32 %v4004_v32, %v1841_v14 }
 0x142   : > { %v2139_v48 = vadd.f32 %v3343_v40, %v1988_v2  ;;  %v2286_v29 = vadd.f32 %v2247_v8, %v2136_v23  ;;  %v1992_v8 = vadd.f32 %v3996_v20, %v1842_v30 }
 0x143   : > { %v2107_v49 = vpop.f32.mrf.mxu0  ;;  %v2257_v52 = vpop.f32.mrf.mxu1 }
 0x144   : > { %v2138_v50 = vadd.f32 %v2107_v49, %v1987_v33  ;;  %v2289_v31 = vadd.f32 %v3357_v0, %v2139_v48 }
 0x145   : > { %v3346_v15 = vpop.f32.mrf.mxu0  ;;  %v3360_v51 = vpop.f32.mrf.mxu1 }
 0x146   : > { %v2141_v39 = vadd.f32 %v3346_v15, %v1990_v63  ;;  %v2288_v55 = vadd.f32 %v2257_v52, %v2138_v50 }
 0x147   : > { %v2117_v54 = vpop.f32.mrf.mxu0  ;;  %v2267_v7 = vpop.f32.mrf.mxu1 }
 0x148   : > { %v2140_v49 = vadd.f32 %v2117_v54, %v1989_v12  ;;  %v2291_v15 = vadd.f32 %v3360_v51, %v2141_v39 }
 0x149   : > { %v3349_v34 = vpop.f32.mrf.mxu0  ;;  %v3363_v9 = vpop.f32.mrf.mxu1 }
 0x14a   : > { %v2143_v58 = vadd.f32 %v3349_v34, %v1992_v8  ;;  %v2290_v19 = vadd.f32 %v2267_v7, %v2140_v49 }
 0x14b   : > { %v2127_v28 = vpop.f32.mrf.mxu0  ;;  %v2277_v35 = vpop.f32.mrf.mxu1 }
 0x14c   : > { %v2142_v54 = vadd.f32 %v2127_v28, %v1991_v24  ;;  %v2293_v22 = vadd.f32 %v3363_v9, %v2143_v58 }
 0x14d   : > { %v3368_v37 = vpop.f32.mrf.mxu0  ;;  %v3382_v3 = vpop.f32.mrf.mxu1 }
 0x14e   : > { %v2438_v42 = vadd.f32 %v3368_v37, %v2287_v38  ;;  %v2292_v11 = vadd.f32 %v2277_v35, %v2142_v54 }
 0x14f   : > { %v2398_v40 = vpop.f32.mrf.mxu0  ;;  %v2548_v59 = vpop.f32.mrf.mxu1 }
 0x150   : > { %v2588_v61 = vadd.f32 %v3382_v3, %v2438_v42  ;;  %v2437_v41 = vadd.f32 %v2398_v40, %v2286_v29 }
 0x151   : > { %v3371_v44 = vpop.f32.mrf.mxu0  ;;  %v3385_v53 = vpop.f32.mrf.mxu1 }
 0x152   : > { %v2603_v4 = vadd.f32 %v3017_v36, %v2588_v61  ;;  %v2587_v57 = vadd.f32 %v2548_v59, %v2437_v41  ;;  %v2440_v43 = vadd.f32 %v3371_v44, %v2289_v31 }
 0x153   : > { %v2408_v46 = vpop.f32.mrf.mxu0  ;;  %v2558_v18 = vpop.f32.mrf.mxu1 }
 0x154   : > { %2611 = vst [vmem:[%s4052_s6 + $0x8] sm:$0xff] %v2603_v4  ;;  %v2602_v20 = vadd.f32 %v3017_v36, %v2587_v57  ;;  %v2590_v0 = vadd.f32 %v3385_v53, %v2440_v43  ;;  %v2439_v16 = vadd.f32 %v2408_v46, %v2288_v55 }
 0x155   : > { %v3374_v52 = vpop.f32.mrf.mxu0  ;;  %v3388_v10 = vpop.f32.mrf.mxu1 }
 0x156   : > { %2610 = vst [vmem:[%s4052_s6] sm:$0xff] %v2602_v20  ;;  %v2605_v32 = vadd.f32 %v3017_v36, %v2590_v0  ;;  %v2589_v51 = vadd.f32 %v2558_v18, %v2439_v16  ;;  %v2442_v45 = vadd.f32 %v3374_v52, %v2291_v15 }
 0x157   : > { %v2418_v1 = vpop.f32.mrf.mxu0  ;;  %v2568_v60 = vpop.f32.mrf.mxu1 }
 0x158   : > { %2613 = vst [vmem:[%s4052_s6 + $0x18] sm:$0xff] %v2605_v32  ;;  %v2604_v5 = vadd.f32 %v3017_v36, %v2589_v51  ;;  %v2592_v56 = vadd.f32 %v3388_v10, %v2442_v45  ;;  %v2441_v21 = vadd.f32 %v2418_v1, %v2290_v19 }
 0x159   : > { %v3377_v7 = vpop.f32.mrf.mxu0  ;;  %v3391_v6 = vpop.f32.mrf.mxu1 }
 0x15a   : > { %2612 = vst [vmem:[%s4052_s6 + $0x10] sm:$0xff] %v2604_v5  ;;  %v2607_v34 = vadd.f32 %v3017_v36, %v2592_v56  ;;  %v2591_v26 = vadd.f32 %v2568_v60, %v2441_v21  ;;  %v2444_v2 = vadd.f32 %v3377_v7, %v2293_v22 }
 0x15b   : > { %v2428_v23 = vpop.f32.mrf.mxu0  ;;  %v2578_v13 = vpop.f32.mrf.mxu1 }
 0x15c   : > { %2615 = vst [vmem:[%s4052_s6 + $0x28] sm:$0xff] %v2607_v34  ;;  %v2606_v9 = vadd.f32 %v3017_v36, %v2591_v26  ;;  %v2594_v25 = vadd.f32 %v3391_v6, %v2444_v2  ;;  %v2443_v47 = vadd.f32 %v2428_v23, %v2292_v11 }
 0x15e   : > { %2614 = vst [vmem:[%s4052_s6 + $0x20] sm:$0xff] %v2606_v9  ;;  %v2609_v28 = vadd.f32 %v3017_v36, %v2594_v25  ;;  %v2593_v62 = vadd.f32 %v2578_v13, %v2443_v47 }
 0x160   : > { %2617 = vst [vmem:[%s4052_s6 + $0x38] sm:$0xff] %v2609_v28  ;;  %v2608_v35 = vadd.f32 %v3017_v36, %v2593_v62 }
 0x162   : > { %2616 = vst [vmem:[%s4052_s6 + $0x30] sm:$0xff] %v2608_v35 }
 0x163   : > { %3463 = shalt.err (!%p3460_p5)
}
 0x164   : > { %s3464_s27 = scalar_lea.hbm %s4065_s18, 1024  ;;  %s3468_s11 = scalar_lea.hbm %s4121_s3, 2048 }
 0x165   : > { %p3465_p6 = scmp.ne.s32.totalorder %s4065_s18, %s3464_s27  ;;  %p3469_p10 = scmp.lt.s32.totalorder %s4065_s18, %s4121_s3 }
 0x166   : > { %p3470_p11 = scmp.lt.s32.totalorder %s3468_s11, %s3464_s27 }
 0x167   : > { %p3466_p7 = pnand %p3465_p6, %p3591_p4 }
 0x168   : > { %p3471_p12 = por %p3470_p11, %p3469_p10 }
 0x169   : > { %p3467_p9 = pneg %p3466_p7 }
 0x16b   : > { %p3472_p13 = pnand %p3471_p12, %p3467_p9 }
 0x16d   : > { %3475 = shalt.err (!%p3472_p13)
}
 0x16e   : > { %s3529_s5 = smov 128   ;;  %s3530_s6 = smov 8  }
 0x16f   : > { %3393 = dma.vmem_to_hbm [thread:$0]  (%p3591_p4), %s4067_s8, 1024, %s4065_s18, %s4073_s15, %s3529_s5, %s3529_s5, %s3530_s6  }
 0x170 PF: > { %p3399_p0 = scmp.ge.s32.totalorder %s3526_s17, 2  ;;  %s2649_s7 = sand.u32 1, %s3506_s12  }
 0x171   : > { %s2650_s9 = scalar_lea.sflag [#allocation3], %s2649_s7 }
 0x172   : > { %p3396_p1 = pnand %p3399_p0, %p3598_p8 }
 0x174   : > { %p3397_p2 = pneg %p3396_p1 }
 0x176   : > { %3501 = dma.done.wait (%p3397_p2), %s2650_s9, 1024  }
 0x177   : > { %3503 = vsyncadd (%p3397_p2), %s2650_s9, 4294966272  ;;  %s16_s17 = sadd.s32 1, %s3526_s17   ;;  %s4144_s12 = smov %s3510_s13 }
 0x178   : > { %p13_p3 = scmp.ge.s32.totalorder %s16_s17, 4   ;;  %s4145_s13 = smov %s3514_s14 }
 0x179   : > { %s4146_s14 = smov %s3604_s25  ;;  %s4147_s15 = smov %s3522_s16 }
 0x17a   : > { %s4148_s16 = smov %s4150_s20  ;;  %15 = sbr.rel (!%p13_p3) target bundleno = 4 (0x4), region = 95 }
 0x17f   :  { %2655 = vsyncpa [#allocation3], 1 }
 0x180   :  { %2657 = vsyncpa [#allocation3 + $0x1], 1 }

</bundles_post_ra>
